<compile_context>
chip_gen: v7x
topology: tpu7x:2x2x1
jax: 0.10.0
libtpu: 0.0.40
codegen_flags: <defaults>
</compile_context>

<pallas_src>
import functools

import numpy as np
import jax
import jax.numpy as jnp
from jax.experimental import pallas as pl
from jax.experimental.pallas import tpu as pltpu

LANE = 128        # lane width
SUBLANE = 8       # sublane width
K_CAND = 16       # candidate frame subsets scored per retry batch
K_PAD = 128       # lane-padded candidate axis for the frame-count matmul
OUT_W = 128       # lane-dense output slab width for the gather kernel


def _round_up(x, m):
    return ((x + m - 1) // m) * m


# ----------------------------------------------------------------------------
# Kernel 1: validity mask
#   valid[n, t] = not (isnan(x[n,t]) or isnan(y[n,t]))
#   (per-row counts are a trivial XLA reduce on this lane-dense output)
# ----------------------------------------------------------------------------
def _validity_kernel(tx_ref, ty_ref, valid_ref):
    invalid = jnp.logical_or(jnp.isnan(tx_ref[...]), jnp.isnan(ty_ref[...]))
    valid_ref[...] = jnp.logical_not(invalid).astype(jnp.float32)


@functools.lru_cache(maxsize=None)
def _validity_call(n_pad, t_pad, tile_n):
    spec = pl.BlockSpec((tile_n, t_pad), lambda i: (i, 0))
    return jax.jit(pl.pallas_call(
        _validity_kernel,
        grid=(n_pad // tile_n,),
        in_specs=[spec, spec],
        out_specs=spec,
        out_shape=jax.ShapeDtypeStruct((n_pad, t_pad), jnp.float32),
        compiler_params=pltpu.CompilerParams(dimension_semantics=("parallel",)),
    ))


# ----------------------------------------------------------------------------
# Kernel 2: batched frame-count scoring
#   counts[n, k] = sum_t can_sample[n, t] * frame_mask[t, k]
#   == can_sample.float()[:, frame_indices_k].sum(dim=1) for all K candidate
#   frame subsets at once, as one MXU matmul.
# ----------------------------------------------------------------------------
def _frame_count_kernel(cs_ref, fm_ref, out_ref):
    out_ref[...] = jnp.dot(cs_ref[...], fm_ref[...],
                           preferred_element_type=jnp.float32)


@functools.lru_cache(maxsize=None)
def _frame_count_call(n_pad, t_pad, tile_n):
    return pl.pallas_call(
        _frame_count_kernel,
        grid=(n_pad // tile_n,),
        in_specs=[pl.BlockSpec((tile_n, t_pad), lambda i: (i, 0)),
                  pl.BlockSpec((t_pad, K_PAD), lambda i: (0, 0))],
        out_specs=pl.BlockSpec((tile_n, K_PAD), lambda i: (i, 0)),
        out_shape=jax.ShapeDtypeStruct((n_pad, K_PAD), jnp.float32),
        compiler_params=pltpu.CompilerParams(dimension_semantics=("parallel",)),
    )


@functools.partial(jax.jit,
                   static_argnames=("t", "t_pad", "num_frames", "tile_n", "n"))
def _score_candidates(kf, cs_pad, *, t, t_pad, num_frames, tile_n, n):
    """One jitted device program per retry batch.

    Returns: perms (K, F) int32, ok_all (n, K) bool, num_ok (K,) int32.
    """
    cand_keys = jax.random.split(kf, K_CAND)
    perms = jax.vmap(lambda k: jax.random.permutation(k, t))(cand_keys)
    perms = perms[:, :num_frames]                                     # (K, F)
    frame_masks = jax.nn.one_hot(perms, t_pad,
                                 dtype=jnp.float32).sum(axis=1)       # (K, T_pad)
    fm_t = jnp.zeros((t_pad, K_PAD), jnp.float32)
    fm_t = fm_t.at[:, :K_CAND].set(frame_masks.T)
    n_pad = cs_pad.shape[0]
    counts_all = _frame_count_call(n_pad, t_pad, tile_n)(cs_pad, fm_t)
    ok_all = counts_all[:n, :K_CAND] >= 2.0                           # (n, K)
    num_ok = jnp.sum(ok_all, axis=0, dtype=jnp.int32)                 # (K,)
    return perms, ok_all, num_ok


@jax.jit
def _pick_two_timesteps(kg, restricted):
    """multinomial(2, replacement=False) over 0/1 weights == uniform choice of
    2 distinct valid timesteps -> Gumbel top-2 (no host sync)."""
    gumbel = jax.random.gumbel(kg, restricted.shape)
    scores = jnp.where(restricted, gumbel, -jnp.inf)
    _, top2 = jax.lax.top_k(scores, 2)                                # (B, 2)
    return top2.astype(jnp.int32)


# ----------------------------------------------------------------------------
# Kernel 3: per-row point gather.
#   Selection mask built in-kernel from int32 timestep indices
#   (iota == t1 / t2); NaNs at non-selected timesteps are masked with `where`.
#   Output: lane-dense (B_pad, 128) slabs  [x, y, t, 0, 0, ...]  per row.
# ----------------------------------------------------------------------------
def _gather_kernel(tx_ref, ty_ref, t1_ref, t2_ref, p1_ref, p2_ref):
    tx = tx_ref[...]
    ty = ty_ref[...]
    b, t = tx.shape
    tidx = jax.lax.broadcasted_iota(jnp.int32, (b, t), 1)
    m1 = tidx == t1_ref[...]          # (B,1) broadcasts across lanes
    m2 = tidx == t2_ref[...]
    x1 = jnp.sum(jnp.where(m1, tx, 0.0), axis=1, keepdims=True)
    y1 = jnp.sum(jnp.where(m1, ty, 0.0), axis=1, keepdims=True)
    x2 = jnp.sum(jnp.where(m2, tx, 0.0), axis=1, keepdims=True)
    y2 = jnp.sum(jnp.where(m2, ty, 0.0), axis=1, keepdims=True)
    lane = jax.lax.broadcasted_iota(jnp.int32, p1_ref.shape, 1)
    t1f = t1_ref[...].astype(jnp.float32)
    t2f = t2_ref[...].astype(jnp.float32)
    p1_ref[...] = (jnp.where(lane == 0, x1, 0.0)
                   + jnp.where(lane == 1, y1, 0.0)
                   + jnp.where(lane == 2, t1f, 0.0))
    p2_ref[...] = (jnp.where(lane == 0, x2, 0.0)
                   + jnp.where(lane == 1, y2, 0.0)
                   + jnp.where(lane == 2, t2f, 0.0))


@functools.lru_cache(maxsize=None)
def _gather_call(b_pad, t_pad):
    spec_bt = pl.BlockSpec((b_pad, t_pad), lambda i: (0, 0))
    spec_b1 = pl.BlockSpec((b_pad, 1), lambda i: (0, 0))
    spec_out = pl.BlockSpec((b_pad, OUT_W), lambda i: (0, 0))
    return jax.jit(pl.pallas_call(
        _gather_kernel,
        grid=(1,),
        in_specs=[spec_bt, spec_bt, spec_b1, spec_b1],
        out_specs=[spec_out, spec_out],
        out_shape=[jax.ShapeDtypeStruct((b_pad, OUT_W), jnp.float32),
                   jax.ShapeDtypeStruct((b_pad, OUT_W), jnp.float32)],
    ))


# ----------------------------------------------------------------------------
# Sampler (keep_in_cpu=False path of the PyTorch module)
# ----------------------------------------------------------------------------
class LongRangeSampler:
    def __init__(self, batch_size, fg_trajectories=None, bg_trajectories=None,
                 fg_traj_ratio=0.5, num_frames=None):
        self.batch_size = batch_size
        self.num_frames = num_frames
        self.fg_traj_ratio = fg_traj_ratio

        self.fg_valid_trajectories, self.fg_can_sample = \
            self.get_valid_trajectories(fg_trajectories)
        self.bg_valid_trajectories, self.bg_can_sample = \
            self.get_valid_trajectories(bg_trajectories)
        self.vid_len = self.fg_valid_trajectories.shape[1]
        self.t_pad = _round_up(self.vid_len, LANE)

        # Padded, device-resident float can_sample planes for the hot path.
        self.fg_cs_pad, self.fg_tile = self._pad_can_sample(self.fg_can_sample)
        self.bg_cs_pad, self.bg_tile = self._pad_can_sample(self.bg_can_sample)

    # ---- init-time validity filtering --------------------------------------
    def get_valid_trajectories(self, trajectories):
        traj = np.asarray(trajectories, dtype=np.float32)            # (N0,T,2)
        n0, t = traj.shape[:2]
        t_pad = _round_up(t, LANE)
        tile = min(512, _round_up(max(n0, SUBLANE), SUBLANE))
        n_pad = _round_up(n0, tile)
        tx = np.full((n_pad, t_pad), np.nan, np.float32)
        ty = np.full((n_pad, t_pad), np.nan, np.float32)
        tx[:n0, :t] = traj[..., 0]
        ty[:n0, :t] = traj[..., 1]
        valid_pad = _validity_call(n_pad, t_pad, tile)(
            jnp.asarray(tx), jnp.asarray(ty))
        valid = valid_pad[:n0, :t]
        counts = jnp.sum(valid, axis=1)      # exact small ints in f32
        keep = np.asarray(counts > 1.0)      # == can_sample.sum(dim=1) > 1
        valid_np = np.asarray(valid) > 0.5
        # TODO(synk): dynamic-shape boolean filtering has no Pallas equivalent;
        # done with host numpy.
        return traj[keep], valid_np[keep]

    def _pad_can_sample(self, can_sample):
        n, t = can_sample.shape
        tile = min(512, _round_up(max(n, SUBLANE), SUBLANE))
        n_pad = _round_up(n, tile)
        cs = np.zeros((n_pad, self.t_pad), np.float32)
        cs[:n, :t] = can_sample.astype(np.float32)
        return jnp.asarray(cs), tile

    def get_fg_batch_size(self):
        return int(self.batch_size * self.fg_traj_ratio)

    # ---- hot path -----------------------------------------------------------
    def get_point_correspondences_for_num_frames(self, valid_trajectories,
                                                 can_sample, cs_pad, tile_n,
                                                 batch_size, key):
        n, t = can_sample.shape

        # Frame-subset selection: score K candidates with ONE compiled device
        # program and ONE tiny D2H sync per retry batch.
        while True:
            key, kf = jax.random.split(key)
            perms, ok_all, num_ok = _score_candidates(
                kf, cs_pad, t=t, t_pad=self.t_pad,
                num_frames=self.num_frames, tile_n=tile_n, n=n)
            num_ok_np = np.asarray(num_ok)                            # tiny sync
            good = np.nonzero(num_ok_np >= 2)[0]
            if good.size > 0:
                k_sel = int(good[0])
                break

        ok = np.asarray(ok_all[:, k_sel])                             # (N,) bool
        frame_indices = np.asarray(perms[k_sel])                      # (F,)

        # TODO(synk): dynamic-shape boolean filtering / randperm subsetting has
        # no Pallas equivalent; done with host numpy.
        trajectories = valid_trajectories[ok]                         # (M,T,2)
        can_sample_cur = can_sample[ok]                               # (M,T)

        key, kb = jax.random.split(key)
        sel = np.asarray(
            jax.random.permutation(kb, trajectories.shape[0])[:batch_size])
        trajs_sel = trajectories[sel]                                 # (B,T,2)
        cs_sel = can_sample_cur[sel]                                  # (B,T)
        restricted = np.zeros_like(cs_sel)
        restricted[:, frame_indices] = cs_sel[:, frame_indices]

        key, kg = jax.random.split(key)
        top2 = _pick_two_timesteps(kg, jnp.asarray(restricted))       # (B,2)
        t1 = top2[:, 0:1]
        t2 = top2[:, 1:2]

        # Gather kernel: in-kernel iota one-hot, lane-dense output slabs.
        b = cs_sel.shape[0]
        b_pad = _round_up(max(b, SUBLANE), SUBLANE)
        tx = np.zeros((b_pad, self.t_pad), np.float32)
        ty = np.zeros((b_pad, self.t_pad), np.float32)
        tx[:b, :t] = trajs_sel[..., 0]
        ty[:b, :t] = trajs_sel[..., 1]
        t1_pad = jnp.zeros((b_pad, 1), jnp.int32).at[:b].set(t1)
        t2_pad = jnp.zeros((b_pad, 1), jnp.int32).at[:b].set(t2)

        p1_pad, p2_pad = _gather_call(b_pad, self.t_pad)(
            jnp.asarray(tx), jnp.asarray(ty), t1_pad, t2_pad)
        return p1_pad[:b, :3], p2_pad[:b, :3]

    def forward(self, key):
        assert self.num_frames is not None, "num_frames must be specified"
        fg_bs = self.get_fg_batch_size()
        bg_bs = self.batch_size - fg_bs
        k1, k2 = jax.random.split(key)
        fg_t1, fg_t2 = self.get_point_correspondences_for_num_frames(
            self.fg_valid_trajectories, self.fg_can_sample,
            self.fg_cs_pad, self.fg_tile, fg_bs, k1)
        bg_t1, bg_t2 = self.get_point_correspondences_for_num_frames(
            self.bg_valid_trajectories, self.bg_can_sample,
            self.bg_cs_pad, self.bg_tile, bg_bs, k2)
        t1_points = jnp.concatenate([fg_t1, bg_t1], axis=0)
        t2_points = jnp.concatenate([fg_t2, bg_t2], axis=0)
        return t1_points, t2_points


# ----------------------------------------------------------------------------
if __name__ == "__main__":
    key = jax.random.PRNGKey(0)

    def make_trajectories(k, n_traj, n_time, nan_prob=0.2):
        kp, kn = jax.random.split(k)
        pts = jax.random.uniform(kp, (n_traj, n_time, 2),
                                 minval=0.0, maxval=64.0)
        nanmask = jax.random.uniform(kn, (n_traj, n_time)) < nan_prob
        pts = jnp.where(nanmask[..., None], jnp.nan, pts)
        return np.asarray(pts, dtype=np.float32)

    key, kfg, kbg, kfwd = jax.random.split(key, 4)
    fg_trajectories = make_trajectories(kfg, n_traj=32, n_time=16)
    bg_trajectories = make_trajectories(kbg, n_traj=32, n_time=16)

    sampler = LongRangeSampler(
        batch_size=8,
        fg_trajectories=fg_trajectories,
        bg_trajectories=bg_trajectories,
        fg_traj_ratio=0.5,
        num_frames=4,
    )

    t1_points, t2_points = sampler.forward(kfwd)
    jax.block_until_ready((t1_points, t2_points))

    assert t1_points.shape == (8, 3) and t2_points.shape == (8, 3)
    assert t1_points.dtype == jnp.float32 and t2_points.dtype == jnp.float32
    assert not bool(jnp.isnan(t1_points).any())
    assert not bool(jnp.isnan(t2_points).any())
    print("KERNEL_OK")
</pallas_src>

<mosaic_0001>
module attributes {stable_mosaic.version = 11 : i64} {
  func.func @_validity_kernel(%arg0: i32, %arg1: memref<32x128xf32, #tpu.memory_space<vmem>>, %arg2: memref<32x128xf32, #tpu.memory_space<vmem>>, %arg3: memref<32x128xf32, #tpu.memory_space<vmem>>) attributes {dimension_semantics = [#tpu.dimension_semantics<parallel>], iteration_bounds = array<i64: 1>, scalar_prefetch = 0 : i64, scratch_operands = 0 : i64, tpu.core_type = #tpu.core_type<tc>, window_params = [{transform_indices = @transform_0, window_bounds = array<i64: 32, 128>}, {transform_indices = @transform_1, window_bounds = array<i64: 32, 128>}, {transform_indices = @transform_2, window_bounds = array<i64: 32, 128>}]} {
    %c0 = arith.constant 0 : index
    %c0_0 = arith.constant 0 : index
    %0 = vector.load %arg1[%c0, %c0_0] : memref<32x128xf32, #tpu.memory_space<vmem>>, vector<32x128xf32>
    %1 = arith.cmpf one, %0, %0 : vector<32x128xf32>
    %c0_1 = arith.constant 0 : index
    %c0_2 = arith.constant 0 : index
    %2 = vector.load %arg2[%c0_1, %c0_2] : memref<32x128xf32, #tpu.memory_space<vmem>>, vector<32x128xf32>
    %3 = arith.cmpf one, %2, %2 : vector<32x128xf32>
    %4 = arith.ori %1, %3 : vector<32x128xi1>
    %cst = arith.constant dense<true> : vector<32x128xi1>
    %5 = arith.xori %4, %cst : vector<32x128xi1>
    %6 = arith.extui %5 : vector<32x128xi1> to vector<32x128xi32>
    %7 = arith.sitofp %6 : vector<32x128xi32> to vector<32x128xf32>
    %c0_3 = arith.constant 0 : index
    %c0_4 = arith.constant 0 : index
    %8 = vector.load %arg3[%c0_3, %c0_4] : memref<32x128xf32, #tpu.memory_space<vmem>>, vector<32x128xf32>
    tpu.vector_store %arg3[%c0_3, %c0_4], %7 {strides = array<i32>} : memref<32x128xf32, #tpu.memory_space<vmem>>, vector<32x128xf32>,
    return
  }
  func.func @transform_0(%arg0: i32) -> (i32, i32) {
    %c0_i32 = arith.constant 0 : i32
    %c0_i32_0 = arith.constant 0 : i32
    return %arg0, %c0_i32 : i32, i32
  }
  func.func @transform_1(%arg0: i32) -> (i32, i32) {
    %c0_i32 = arith.constant 0 : i32
    %c0_i32_0 = arith.constant 0 : i32
    return %arg0, %c0_i32 : i32, i32
  }
  func.func @transform_2(%arg0: i32) -> (i32, i32) {
    %c0_i32 = arith.constant 0 : i32
    %c0_i32_0 = arith.constant 0 : i32
    return %arg0, %c0_i32 : i32, i32
  }
}

</mosaic_0001>

<bundles_post_ra>
// kernel: tpu_custom_call.1
= control target key start
LH: loop header
LB: loop body
LE: loop exit
PB: predicated region body
PF: predicated region fallthrough
CT: control target
= control target key end

     0   :  { %7 = vsyncpa [#allocation3], 0  ;;  %s248_s0 = inlined_call_operand.hbm [shape: f32[32,128], index: 0, kind: input, shape index: {}]   ;;  %s249_s1 = inlined_call_operand.hbm [shape: f32[32,128], index: 1, kind: input, shape index: {}]   ;;  %s250_s2 = inlined_call_operand.hbm [shape: f32[32,128], index: 2, kind: output, shape index: {}]  }
   0x1   :  { %8 = vsyncpa [#allocation6], 0 }
   0x2   :  { %9 = vsyncpa [#allocation4], 0  ;;  %s177_s9 = smov [#allocation2]   ;;  %s105_s13 = scalar_lea.hbm %s248_s0, 512 }
   0x3   :  { %s15_s10 = sshll.u32 %s177_s9, 4  ;;  %p106_p0 = scmp.ne.s32.totalorder %s248_s0, %s105_s13  ;;  %s16_s10 = int_to_ptr.vmem [resolvable:$true] %s15_s10 }
   0x4   :  { %p109_p1 = scmp.lt.u32.totalorder %s105_s13, %s248_s0 }
   0x6   :  { %p111_p2 = pnand %p109_p1, %p106_p0 }
   0x8   :  { %114 = shalt.err (!%p111_p2)
}
   0x9   :  { %s115_s18 = scalar_lea.vmem %s16_s10, 512  ;;  %p120_p4 = scmp.lt.s32.totalorder %s16_s10, %s16_s10 }
   0xa   :  { %p116_p3 = scmp.ne.s32.totalorder %s16_s10, %s115_s18  ;;  %p121_p5 = scmp.lt.s32.totalorder %s115_s18, %s115_s18 }
   0xc   :  { %p122_p6 = por %p121_p5, %p120_p4 }
   0xe   :  { %p123_p7 = pnand %p122_p6, %p116_p3 }
  0x10   :  { %126 = shalt.err (!%p123_p7)
}
  0x11   :  { %s178_s19 = smov 128   ;;  %s179_s20 = smov 8  }
  0x12   :  { %21 = dma.hbm_to_vmem [thread:$0]  %s248_s0, 512, %s16_s10, [#allocation3], %s178_s19, %s178_s19, %s179_s20  }
  0x13   :  { %s180_s23 = smov [#allocation5]   ;;  %s127_s27 = scalar_lea.hbm %s249_s1, 512 }
  0x14   :  { %s27_s24 = sshll.u32 %s180_s23, 4  ;;  %p128_p8 = scmp.ne.s32.totalorder %s249_s1, %s127_s27  ;;  %s28_s24 = int_to_ptr.vmem [resolvable:$true] %s27_s24 }
  0x15   :  { %p131_p9 = scmp.lt.u32.totalorder %s127_s27, %s249_s1 }
  0x17   :  { %p133_p10 = pnand %p131_p9, %p128_p8 }
  0x19   :  { %136 = shalt.err (!%p133_p10)
}
  0x1a   :  { %s137_s4 = scalar_lea.vmem %s28_s24, 512  ;;  %p142_p12 = scmp.lt.s32.totalorder %s28_s24, %s28_s24 }
  0x1b   :  { %p138_p11 = scmp.ne.s32.totalorder %s28_s24, %s137_s4  ;;  %p143_p13 = scmp.lt.s32.totalorder %s137_s4, %s137_s4 }
  0x1d   :  { %p144_p0 = por %p143_p13, %p142_p12 }
  0x1f   :  { %p145_p1 = pnand %p144_p0, %p138_p11 }
  0x21   :  { %148 = shalt.err (!%p145_p1)
}
  0x22   :  { %33 = dma.hbm_to_vmem [thread:$0]  %s249_s1, 512, %s28_s24, [#allocation6], %s178_s19, %s178_s19, %s179_s20  }
  0x23   :  { %171 = dma.done.wait [#allocation3], 512  }
  0x24   :  { %172 = vsyncadd [#allocation3], 4294966784 }
  0x25   :  { %173 = dma.done.wait [#allocation6], 512  }
  0x26   :  { %174 = vsyncadd [#allocation6], 4294966784  ;;  %v40_v0 = vld [vmem:[#allocation2] sm:$0xff]  ;;  %v41_v2 = vld [vmem:[#allocation2 + $0x8] sm:$0xff]  ;;  %vm181_vm5 = vmmov 1   ;;  %v182_v8 = vmov 0.0  }
  0x27   :  { %v48_v1 = vld [vmem:[#allocation5] sm:$0xff]  ;;  %vm44_vm0 = vcmp.ne.f32.partialorder %v40_v0, %v40_v0  ;;  %vm45_vm2 = vcmp.ne.f32.partialorder %v41_v2, %v41_v2  ;;  %v49_v3 = vld [vmem:[#allocation5 + $0x8] sm:$0xff]  ;;  %v42_v4 = vld [vmem:[#allocation2 + $0x10] sm:$0xff]  ;;  %s183_s1 = smov [#allocation7]  }
  0x28   :  { %vm52_vm1 = vcmp.ne.f32.partialorder %v48_v1, %v48_v1  ;;  %v50_v5 = vld [vmem:[#allocation5 + $0x10] sm:$0xff]  ;;  %vm53_vm4 = vcmp.ne.f32.partialorder %v49_v3, %v49_v3  ;;  %v43_v6 = vld [vmem:[#allocation2 + $0x18] sm:$0xff]  ;;  %vm46_vm7 = vcmp.ne.f32.partialorder %v42_v4, %v42_v4  ;;  %s81_s6 = sshll.u32 %s183_s1, 4  ;;  %s82_s6 = int_to_ptr.vmem [resolvable:$true] %s81_s6 }
  0x29   :  { %vm56_vm3 = vmor %vm44_vm0, %vm52_vm1  ;;  %v51_v7 = vld [vmem:[#allocation5 + $0x18] sm:$0xff]  ;;  %vm54_vm8 = vcmp.ne.f32.partialorder %v50_v5, %v50_v5  ;;  %vm47_vm11 = vcmp.ne.f32.partialorder %v43_v6, %v43_v6  ;;  %s149_s7 = scalar_lea.vmem %s82_s6, 512  ;;  %p154_p3 = scmp.lt.s32.totalorder %s82_s6, %s82_s6 }
  0x2a   :  { %vm60_vm6 = vmxor %vm56_vm3, %vm181_vm5  ;;  %vm55_vm12 = vcmp.ne.f32.partialorder %v51_v7, %v51_v7  ;;  %p150_p2 = scmp.ne.s32.totalorder %s82_s6, %s149_s7  ;;  %p155_p4 = scmp.lt.s32.totalorder %s149_s7, %s149_s7 }
  0x2b   :  { %v94_v9 = vsel %vm60_vm6, 1.0, %v182_v8  ;;  %vm57_vm9 = vmor %vm45_vm2, %vm53_vm4 }
  0x2c   :  { %72 = vst [vmem:[#allocation7] sm:$0xff] %v94_v9  ;;  %vm61_vm10 = vmxor %vm57_vm9, %vm181_vm5  ;;  %p156_p5 = por %p155_p4, %p154_p3 }
  0x2d   :  { %v95_v10 = vsel %vm61_vm10, 1.0, %v182_v8  ;;  %vm58_vm13 = vmor %vm46_vm7, %vm54_vm8 }
  0x2e   :  { %73 = vst [vmem:[#allocation7 + $0x8] sm:$0xff] %v95_v10  ;;  %vm62_vm14 = vmxor %vm58_vm13, %vm181_vm5  ;;  %p157_p6 = pnand %p156_p5, %p150_p2 }
  0x2f   :  { %v96_v11 = vsel %vm62_vm14, 1.0, %v182_v8  ;;  %vm59_vm15 = vmor %vm47_vm11, %vm55_vm12 }
  0x30   :  { %74 = vst [vmem:[#allocation7 + $0x10] sm:$0xff] %v96_v11  ;;  %vm63_vm0 = vmxor %vm59_vm15, %vm181_vm5 }
  0x31   :  { %v97_v12 = vsel %vm63_vm0, 1.0, %v182_v8 }
  0x32   :  { %75 = vst [vmem:[#allocation7 + $0x18] sm:$0xff] %v97_v12 }
  0x33   :  { %160 = shalt.err (!%p157_p6)
}
  0x34   :  { %s161_s10 = scalar_lea.hbm %s250_s2, 512 }
  0x35   :  { %p162_p7 = scmp.ne.s32.totalorder %s250_s2, %s161_s10  ;;  %p165_p8 = scmp.lt.u32.totalorder %s161_s10, %s250_s2 }
  0x37   :  { %p167_p9 = pnand %p165_p8, %p162_p7 }
  0x39   :  { %170 = shalt.err (!%p167_p9)
}
  0x3a   :  { %87 = dma.vmem_to_hbm [thread:$0]  %s82_s6, 512, %s250_s2, [#allocation4], %s178_s19, %s178_s19, %s179_s20  }
  0x3b   :  { %175 = dma.done.wait [#allocation4], 512  }
  0x3c   :  { %176 = vsyncadd [#allocation4], 4294966784 }
  0x3d   :  { %91 = vsyncpa [#allocation3], 1 }
  0x3e   :  { %92 = vsyncpa [#allocation6], 1 }
  0x3f   :  { %93 = vsyncpa [#allocation4], 1 }

</bundles_post_ra>
